<compile_context>
chip_gen: v7x
topology: tpu7x:2x2x1
jax: 0.10.0
libtpu: 0.0.40
codegen_flags: <defaults>
</compile_context>

<pallas_src>
import functools
import math

import jax
import jax.numpy as jnp
from jax.experimental import pallas as pl
from jax.experimental.pallas import tpu as pltpu


def _label_adapter_kernel(x_ref, wt_ref, pnt_ref, hw_ref, hb_ref, y_ref, o_ref,
                          *, inv_temperature: float):
    # (TILE_N, x_dim) @ (x_dim, hid_dim) on the MXU with f32 accumulation.
    v = jnp.dot(x_ref[...], wt_ref[...], preferred_element_type=jnp.float32)

    # cosine: L2-normalize rows of v (P rows already normalized in the wrapper).
    # Matches torch's cosine(): x / (||x|| + 1e-8).
    norm = jnp.sqrt(jnp.sum(v * v, axis=-1, keepdims=True)) + 1e-8
    v_norm = v / norm

    # gate logits and softmax over num_head (tiny last dim).
    logits = jnp.dot(v_norm, pnt_ref[...], preferred_element_type=jnp.float32)
    logits = logits * inv_temperature
    logits = logits - jnp.max(logits, axis=-1, keepdims=True)
    e = jnp.exp(logits)
    gate = e * pl.reciprocal(jnp.sum(e, axis=-1, keepdims=True), approx=True)

    # LabelAdaptHeads, forward/inverse pre-folded into hw_eff * y + hb_eff.
    heads = hw_ref[...] * y_ref[...] + hb_ref[...]           # (TILE_N, num_head)

    o_ref[...] = jnp.sum(gate * heads, axis=-1, keepdims=True)   # (TILE_N, 1)


def label_adapter_forward(x, y, params, *, temperature=4.0, inverse=False,
                          tile_n=None):
    """x: (N, ...) flattened to (N, x_dim); y: (N,) or (N,1). Returns (N,)."""
    lin_w, P, hw, hb = params
    n = x.shape[0]
    x2d = x.reshape(n, -1)                     # keep input dtype (f32 or bf16)
    x_dim = x2d.shape[1]
    hid_dim = lin_w.shape[0]
    num_head = P.shape[0]

    # ---- grid-invariant preprocessing, hoisted out of the kernel (runs once) ----
    w_t = jnp.transpose(lin_w).astype(x2d.dtype)                   # (x_dim, hid_dim)
    p_norm = P / (jnp.sqrt(jnp.sum(P * P, axis=-1, keepdims=True)) + 1e-8)
    p_norm_t = jnp.transpose(p_norm).astype(jnp.float32)           # (hid_dim, num_head)
    hw_eps = (hw + 1e-9).astype(jnp.float32)
    if inverse:
        inv_w = 1.0 / hw_eps
        hw_eff = inv_w
        hb_eff = -hb.astype(jnp.float32) * inv_w
    else:
        hw_eff = hw_eps
        hb_eff = hb.astype(jnp.float32)
    y2d = y.reshape(-1, 1).astype(jnp.float32)                     # (n, 1)

    # ---- tile size: largest N-tile whose double-buffered x stream fits VMEM ----
    if tile_n is None:
        bytes_per_row = x_dim * jnp.dtype(x2d.dtype).itemsize
        budget = 8 * 1024 * 1024                  # per x buffer (×2 double-buffer)
        tile_n = (budget // max(bytes_per_row, 1)) // 8 * 8
        tile_n = max(8, min(1024, tile_n))
    tile_n = max(8, (int(tile_n) // 8) * 8)
    n_pad8 = -(-n // 8) * 8
    tile_n = min(tile_n, n_pad8)
    n_pad = -(-n // tile_n) * tile_n
    if n_pad != n:
        # zero-pad rows: zero rows are numerically safe (uniform gate), then sliced off.
        x2d = jnp.pad(x2d, ((0, n_pad - n), (0, 0)))
        y2d = jnp.pad(y2d, ((0, n_pad - n), (0, 0)))

    grid = (n_pad // tile_n,)
    kernel = functools.partial(_label_adapter_kernel,
                               inv_temperature=1.0 / float(temperature))

    out2d = pl.pallas_call(
        kernel,
        out_shape=jax.ShapeDtypeStruct((n_pad, 1), jnp.float32),
        grid=grid,
        in_specs=[
            pl.BlockSpec((tile_n, x_dim), lambda i: (i, 0)),        # x  : streamed
            pl.BlockSpec((x_dim, hid_dim), lambda i: (0, 0)),       # W^T: resident
            pl.BlockSpec((hid_dim, num_head), lambda i: (0, 0)),    # Pn^T: resident
            pl.BlockSpec((1, num_head), lambda i: (0, 0)),          # hw_eff
            pl.BlockSpec((1, num_head), lambda i: (0, 0)),          # hb_eff
            pl.BlockSpec((tile_n, 1), lambda i: (i, 0)),            # y  : streamed
        ],
        out_specs=pl.BlockSpec((tile_n, 1), lambda i: (i, 0)),
        compiler_params=pltpu.CompilerParams(
            dimension_semantics=("parallel",),        # shard tiles across v7x's 2 TCs
            vmem_limit_bytes=32 * 1024 * 1024),
    )(x2d, w_t, p_norm_t, hw_eff, hb_eff, y2d)

    return out2d[:n, 0]


def init_params(key, x_dim, num_head=4, hid_dim=32):
    """Deterministic synthetic init mirroring the torch module's __init__ shapes."""
    k1, k2, k3 = jax.random.split(key, 3)
    # nn.Linear(x_dim, hid_dim, bias=False): weight (hid_dim, x_dim)
    bound_lin = 1.0 / math.sqrt(x_dim)
    lin_w = jax.random.uniform(k1, (hid_dim, x_dim), jnp.float32,
                               -bound_lin, bound_lin)
    # P: (num_head, hid_dim), kaiming_uniform(a=sqrt(5)) -> U(-1/sqrt(hid_dim), 1/sqrt(hid_dim))
    bound_p = 1.0 / math.sqrt(hid_dim)
    P = jax.random.uniform(k2, (num_head, hid_dim), jnp.float32, -bound_p, bound_p)
    # heads.weight ~ U(0.75, 1.25), heads.bias = 1/8
    hw = jax.random.uniform(k3, (1, num_head), jnp.float32, 0.75, 1.25)
    hb = jnp.full((1, num_head), 1.0 / 8.0, jnp.float32)
    return lin_w, P, hw, hb


def _reference(x, y, params, temperature=4.0, inverse=False):
    lin_w, P, hw, hb = params
    n = x.shape[0]
    v = x.reshape(n, -1).astype(jnp.float32) @ lin_w.T
    eps = 1e-8
    vn = v / (jnp.linalg.norm(v, axis=-1, keepdims=True) + eps)
    pn = P / (jnp.linalg.norm(P, axis=-1, keepdims=True) + eps)
    gate = jax.nn.softmax((vn @ pn.T) / temperature, axis=-1)
    y2 = y.reshape(-1, 1)
    if inverse:
        heads = (y2 - hb) / (hw + 1e-9)
    else:
        heads = (hw + 1e-9) * y2 + hb
    return (gate * heads).sum(-1)


if __name__ == "__main__":
    key = jax.random.PRNGKey(0)
    kx, ky, kp = jax.random.split(key, 3)

    # Small shapes; tile_n=16 with N=40 exercises multi-tile grid + padding path.
    N, x_dim, num_head, hid_dim = 40, 64, 4, 32
    x = jax.random.normal(kx, (N, x_dim), jnp.float32)
    y = jax.random.normal(ky, (N,), jnp.float32)
    params = init_params(kp, x_dim, num_head=num_head, hid_dim=hid_dim)

    out = jax.block_until_ready(
        label_adapter_forward(x, y, params, temperature=4.0, inverse=False,
                              tile_n=16))
    ref = _reference(x, y, params, temperature=4.0, inverse=False)
    assert out.shape == (N,)
    # tolerance covers the approx (EUP) reciprocal in the softmax denominator
    assert jnp.allclose(out, ref, atol=2e-3, rtol=2e-3), (out, ref)

    # also exercise the inverse path (folded to multiply-add in the wrapper)
    out_inv = jax.block_until_ready(
        label_adapter_forward(x, y, params, temperature=4.0, inverse=True,
                              tile_n=16))
    ref_inv = _reference(x, y, params, temperature=4.0, inverse=True)
    assert jnp.allclose(out_inv, ref_inv, atol=2e-3, rtol=2e-3), (out_inv, ref_inv)

    print("KERNEL_OK")
</pallas_src>

<mosaic_0001>
module attributes {stable_mosaic.version = 11 : i64} {
  func.func @_label_adapter_kernel(%arg0: i32, %arg1: memref<16x64xf32, #tpu.memory_space<vmem>>, %arg2: memref<64x32xf32, #tpu.memory_space<vmem>>, %arg3: memref<32x4xf32, #tpu.memory_space<vmem>>, %arg4: memref<1x4xf32, #tpu.memory_space<vmem>>, %arg5: memref<1x4xf32, #tpu.memory_space<vmem>>, %arg6: memref<16x1xf32, #tpu.memory_space<vmem>>, %arg7: memref<16x1xf32, #tpu.memory_space<vmem>>) attributes {dimension_semantics = [#tpu.dimension_semantics<parallel>], iteration_bounds = array<i64: 3>, scalar_prefetch = 0 : i64, scratch_operands = 0 : i64, tpu.core_type = #tpu.core_type<tc>, window_params = [{transform_indices = @transform_0, window_bounds = array<i64: 16, 64>}, {pipeline_mode = #tpu.pipeline_mode<synchronous>, transform_indices = @transform_1, window_bounds = array<i64: 64, 32>}, {pipeline_mode = #tpu.pipeline_mode<synchronous>, transform_indices = @transform_2, window_bounds = array<i64: 32, 4>}, {pipeline_mode = #tpu.pipeline_mode<synchronous>, transform_indices = @transform_3, window_bounds = array<i64: 1, 4>}, {pipeline_mode = #tpu.pipeline_mode<synchronous>, transform_indices = @transform_4, window_bounds = array<i64: 1, 4>}, {transform_indices = @transform_5, window_bounds = array<i64: 16, 1>}, {transform_indices = @transform_6, window_bounds = array<i64: 16, 1>}]} {
    %c0 = arith.constant 0 : index
    %c0_0 = arith.constant 0 : index
    %0 = vector.load %arg1[%c0, %c0_0] : memref<16x64xf32, #tpu.memory_space<vmem>>, vector<16x64xf32>
    %c0_1 = arith.constant 0 : index
    %c0_2 = arith.constant 0 : index
    %1 = vector.load %arg2[%c0_1, %c0_2] : memref<64x32xf32, #tpu.memory_space<vmem>>, vector<64x32xf32>
    %cst = arith.constant dense<0.000000e+00> : vector<16x32xf32>
    %2 = tpu.matmul %0, %1, %cst {dimension_numbers = #tpu.dot_dimension_numbers<[1], [0], [0], [1], [0, 0, 1, 1], [], []>} : vector<16x64xf32>, vector<64x32xf32>, vector<16x32xf32> -> vector<16x32xf32>
    %3 = arith.mulf %2, %2 : vector<16x32xf32>
    %cst_3 = arith.constant dense<0.000000e+00> : vector<16xf32>
    %4 = vector.multi_reduction <add>, %3, %cst_3 [1] : vector<16x32xf32> to vector<16xf32>
    %5 = vector.shape_cast %4 : vector<16xf32> to vector<16x1xf32>
    %6 = math.sqrt %5 : vector<16x1xf32>
    %cst_4 = arith.constant 9.99999993E-9 : f32
    %7 = vector.broadcast %cst_4 : f32 to vector<16x1xf32>
    %8 = arith.addf %6, %7 : vector<16x1xf32>
    %9 = vector.broadcast %8 : vector<16x1xf32> to vector<16x32xf32>
    %10 = arith.divf %2, %9 : vector<16x32xf32>
    %c0_5 = arith.constant 0 : index
    %c0_6 = arith.constant 0 : index
    %11 = vector.load %arg3[%c0_5, %c0_6] : memref<32x4xf32, #tpu.memory_space<vmem>>, vector<32x4xf32>
    %cst_7 = arith.constant dense<0.000000e+00> : vector<16x4xf32>
    %12 = tpu.matmul %10, %11, %cst_7 {dimension_numbers = #tpu.dot_dimension_numbers<[1], [0], [0], [1], [0, 0, 1, 1], [], []>} : vector<16x32xf32>, vector<32x4xf32>, vector<16x4xf32> -> vector<16x4xf32>
    %cst_8 = arith.constant 2.500000e-01 : f32
    %13 = vector.broadcast %cst_8 : f32 to vector<16x4xf32>
    %14 = arith.mulf %12, %13 : vector<16x4xf32>
    %cst_9 = arith.constant dense<0xFF800000> : vector<16xf32>
    %15 = vector.multi_reduction <maximumf>, %14, %cst_9 [1] : vector<16x4xf32> to vector<16xf32>
    %16 = vector.shape_cast %15 : vector<16xf32> to vector<16x1xf32>
    %17 = vector.broadcast %16 : vector<16x1xf32> to vector<16x4xf32>
    %18 = arith.subf %14, %17 : vector<16x4xf32>
    %19 = math.exp %18 : vector<16x4xf32>
    %cst_10 = arith.constant dense<0.000000e+00> : vector<16xf32>
    %20 = vector.multi_reduction <add>, %19, %cst_10 [1] : vector<16x4xf32> to vector<16xf32>
    %21 = vector.shape_cast %20 : vector<16xf32> to vector<16x1xf32>
    %22 = tpu.reciprocal %21 {approx = true} : vector<16x1xf32> -> vector<16x1xf32>
    %23 = vector.broadcast %22 : vector<16x1xf32> to vector<16x4xf32>
    %24 = arith.mulf %19, %23 : vector<16x4xf32>
    %c0_11 = arith.constant 0 : index
    %c0_12 = arith.constant 0 : index
    %25 = vector.load %arg4[%c0_11, %c0_12] : memref<1x4xf32, #tpu.memory_space<vmem>>, vector<1x4xf32>
    %c0_13 = arith.constant 0 : index
    %c0_14 = arith.constant 0 : index
    %26 = vector.load %arg6[%c0_13, %c0_14] : memref<16x1xf32, #tpu.memory_space<vmem>>, vector<16x1xf32>
    %27 = vector.broadcast %25 : vector<1x4xf32> to vector<16x4xf32>
    %28 = vector.broadcast %26 : vector<16x1xf32> to vector<16x4xf32>
    %29 = arith.mulf %27, %28 : vector<16x4xf32>
    %c0_15 = arith.constant 0 : index
    %c0_16 = arith.constant 0 : index
    %30 = vector.load %arg5[%c0_15, %c0_16] : memref<1x4xf32, #tpu.memory_space<vmem>>, vector<1x4xf32>
    %31 = vector.broadcast %30 : vector<1x4xf32> to vector<16x4xf32>
    %32 = arith.addf %29, %31 : vector<16x4xf32>
    %33 = arith.mulf %24, %32 : vector<16x4xf32>
    %cst_17 = arith.constant dense<0.000000e+00> : vector<16xf32>
    %34 = vector.multi_reduction <add>, %33, %cst_17 [1] : vector<16x4xf32> to vector<16xf32>
    %35 = vector.shape_cast %34 : vector<16xf32> to vector<16x1xf32>
    %c0_18 = arith.constant 0 : index
    %c0_19 = arith.constant 0 : index
    %36 = vector.load %arg7[%c0_18, %c0_19] : memref<16x1xf32, #tpu.memory_space<vmem>>, vector<16x1xf32>
    tpu.vector_store %arg7[%c0_18, %c0_19], %35 {strides = array<i32>} : memref<16x1xf32, #tpu.memory_space<vmem>>, vector<16x1xf32>,
    return
  }
  func.func @transform_0(%arg0: i32) -> (i32, i32) {
    %c0_i32 = arith.constant 0 : i32
    %c0_i32_0 = arith.constant 0 : i32
    return %arg0, %c0_i32 : i32, i32
  }
  func.func @transform_1(%arg0: i32) -> (i32, i32) {
    %c0_i32 = arith.constant 0 : i32
    %c0_i32_0 = arith.constant 0 : i32
    %c0_i32_1 = arith.constant 0 : i32
    return %c0_i32, %c0_i32_0 : i32, i32
  }
  func.func @transform_2(%arg0: i32) -> (i32, i32) {
    %c0_i32 = arith.constant 0 : i32
    %c0_i32_0 = arith.constant 0 : i32
    %c0_i32_1 = arith.constant 0 : i32
    return %c0_i32, %c0_i32_0 : i32, i32
  }
  func.func @transform_3(%arg0: i32) -> (i32, i32) {
    %c0_i32 = arith.constant 0 : i32
    %c0_i32_0 = arith.constant 0 : i32
    %c0_i32_1 = arith.constant 0 : i32
    return %c0_i32, %c0_i32_0 : i32, i32
  }
  func.func @transform_4(%arg0: i32) -> (i32, i32) {
    %c0_i32 = arith.constant 0 : i32
    %c0_i32_0 = arith.constant 0 : i32
    %c0_i32_1 = arith.constant 0 : i32
    return %c0_i32, %c0_i32_0 : i32, i32
  }
  func.func @transform_5(%arg0: i32) -> (i32, i32) {
    %c0_i32 = arith.constant 0 : i32
    %c0_i32_0 = arith.constant 0 : i32
    return %arg0, %c0_i32 : i32, i32
  }
  func.func @transform_6(%arg0: i32) -> (i32, i32) {
    %c0_i32 = arith.constant 0 : i32
    %c0_i32_0 = arith.constant 0 : i32
    return %arg0, %c0_i32 : i32, i32
  }
}

</mosaic_0001>

<bundles_post_ra>
// kernel: tpu_custom_call.1
= control target key start
LH: loop header
LB: loop body
LE: loop exit
PB: predicated region body
PF: predicated region fallthrough
CT: control target
= control target key end

     0   :  { %s777_s21 = smov 0   ;;  %s854_s0 = inlined_call_operand.vmem [shape: f32[48,64], index: 0, kind: input, shape index: {}]   ;;  %s855_s1 = inlined_call_operand.vmem [shape: f32[64,32], index: 1, kind: input, shape index: {}]   ;;  %s856_s2 = inlined_call_operand.vmem [shape: f32[32,4], index: 2, kind: input, shape index: {}]   ;;  %s857_s3 = inlined_call_operand.vmem [shape: f32[1,4], index: 3, kind: input, shape index: {}]   ;;  %s858_s4 = inlined_call_operand.vmem [shape: f32[1,4], index: 4, kind: input, shape index: {}]   ;;  %s859_s5 = inlined_call_operand.vmem [shape: f32[48,1], index: 5, kind: input, shape index: {}]   ;;  %s860_s6 = inlined_call_operand.vmem [shape: f32[48,1], index: 6, kind: output, shape index: {}]  }
   0x1 LB: > { %s617_s22 = sadd.s32 4294967295, %s739_s21   ;;  %p621_p0 = scmp.ge.s32.totalorder %s739_s21, 1  ;;  %s739_s21 = sphi %s777_s21, %s16_s21  }
   0x2   : > { %p224_p1 = scmp.lt.s32.totalorder %s739_s21, 4 }
   0x4   : > { %p225_p2 = pnand %p621_p0, %p224_p1 }
   0x5   : > { %v279_v0 = vld [vmem:[%s855_s1] sm:$0xff] (!%p225_p2)  ;;  %v280_v1 = vld [vmem:[%s855_s1 + $0x8] sm:$0xff] (!%p225_p2)  ;;  %v281_v2 = vld [vmem:[%s855_s1 + $0x10] sm:$0xff] (!%p225_p2)  ;;  %s622_s29 = sshll.u32 (!%p225_p2), %s617_s22, 1  ;;  %vm287_vm0 = vcmask (!%p225_p2), 523264   ;;  %vm371_vm1 = vcmask (!%p225_p2), 261120  }
   0x6   : > { %228 = sbr.rel (%p225_p2) target bundleno = 1095 (0x447), region = 44  ;;  %v682_v3 = vpack.c.bf16 (!%p225_p2), %v280_v1, %v279_v0  ;;  %v282_v4 = vld [vmem:[%s855_s1 + $0x18] sm:$0xff] (!%p225_p2)  ;;  %p260_p3 = scmp.lt.s32.totalorder (!%p225_p2), %s622_s29, 5  ;;  %v283_v6 = vld [vmem:[%s855_s1 + $0x20] sm:$0xff] (!%p225_p2)  ;;  %v284_v7 = vld [vmem:[%s855_s1 + $0x28] sm:$0xff] (!%p225_p2)  ;;  %vm485_vm6 = vcmask (!%p225_p2), 31744  }
   0x7   : > { %v686_v5 = vpack.c.bf16 (!%p225_p2), %v282_v4, %v281_v2  ;;  %v690_v8 = vpack.c.bf16 (!%p225_p2), %v284_v7, %v283_v6  ;;  %v285_v9 = vld [vmem:[%s855_s1 + $0x30] sm:$0xff] (!%p225_p2)  ;;  %v286_v10 = vld [vmem:[%s855_s1 + $0x38] sm:$0xff] (!%p225_p2)  ;;  %v398_v20 = vld [vmem:[%s856_s2] sm:$0xff] (!%p225_p2)  ;;  %v741_v50 = vmov (!%p225_p2), 0   ;;  %vm546_vm7 = vcmask (!%p225_p2), 7168  }
   0x8   : > { %683 = vmatprep.subr.bf16.mxu0 (!%p225_p2), %v682_v3  ;;  %v694_v12 = vpack.c.bf16 (!%p225_p2), %v286_v10, %v285_v9  ;;  %v399_v21 = vld [vmem:[%s856_s2 + $0x8] sm:$0xff] (!%p225_p2)  ;;  %v400_v22 = vld [vmem:[%s856_s2 + $0x10] sm:$0xff] (!%p225_p2)  ;;  %v401_v24 = vld [vmem:[%s856_s2 + $0x18] sm:$0xff] (!%p225_p2)  ;;  %715 = vset.pattern.permute.xlu0 (!%p225_p2), %v741_v50 }
   0x9   : > { %685 = vmatpush3.bf16.msra.mxu0 (!%p225_p2), %v682_v3  ;;  %v698_v23 = vpack.c.bf16 (!%p225_p2), %v399_v21, %v398_v20  ;;  %v702_v25 = vpack.c.bf16 (!%p225_p2), %v401_v24, %v400_v22  ;;  %716 = vset.pattern.permute.xlu1 (!%p225_p2), %v741_v50  ;;  %v632_v1 = vld [vmem:[%s857_s3] ss:$0 sm:$0xff] (!%p225_p2) }
   0xa   : > { %687 = vmatprep.subr.bf16.mxu0 (!%p225_p2), %v686_v5  ;;  %v633_v2 = vld [vmem:[%s858_s4] ss:$0 sm:$0xff] (!%p225_p2) }
   0xb   : > { %699 = vmatprep.subr.bf16.mxu1 (!%p225_p2), %v698_v23 }
   0xc   : > { %701 = vmatpush3.bf16.msra.mxu1 (!%p225_p2), %v698_v23 }
   0xd   : > { %s862_s29 = smov (!%p260_p3, %s622_s29), 5  ;;  %689 = vmatpush3.bf16.msra.mxu0 %v686_v5  ;;  %703 = vmatprep.subr.bf16.mxu1 %v702_v25 }
   0xe   : > { %s803_s12 = sshll.u32 %s862_s29, 3  ;;  %691 = vmatprep.subr.bf16.mxu0 %v690_v8 }
   0xf   : > { %s263_s19 = scalar_lea.vmem %s854_s0, %s803_s12  ;;  %s269_s7 = scalar_lea.vmem %s859_s5, %s803_s12 }
  0x10   : > { %v277_v11 = vld [vmem:[%s263_s19] sm:$0xff]  ;;  %v278_v13 = vld [vmem:[%s263_s19 + $0x8] sm:$0xff]  ;;  %705 = vmatpush3.bf16.msra.mxu1 %v702_v25  ;;  %s275_s15 = scalar_lea.vmem %s860_s6, %s803_s12 }
  0x11   : > { %668 = vmatprep.mubr.msk.f32.mxu0 %vm287_vm0, %v277_v11  ;;  %693 = vmatpush3.bf16.msra.mxu0 %v690_v8  ;;  %v510_v61 = vld [vmem:[%s269_s7 + $0x8] sm:$0xff]  ;;  %v509_v62 = vld [vmem:[%s269_s7] sm:$0xff] }
  0x12   : > { %695 = vmatprep.subr.bf16.mxu0 %v694_v12 }
  0x15   : > { %697 = vmatpush3.bf16.msra.mxu0 %v694_v12 }
  0x18   : > { %669 = vmatmul.mubr.msk.f32.vlgmr.msra.gmra.mrb[0].mxu0 %vm287_vm0, %v278_v13 }
  0xeb   : > { %v670_v14 = vpop.f32.mrb[0].mxu0 }
  0xec   : > { %v360_v15 = vpop.f32.mrb[1].mxu0  ;;  %v370_v17 = vmul.f32 %v670_v14, %v670_v14 }
  0xed   : > { %v369_v16 = vmul.f32 %v360_v15, %v360_v15 }
  0xee   : > { %v375_v19 = vsel %vm371_vm1, %v370_v17, 0.0 }
  0xef   : > { %v372_v18 = vsel %vm371_vm1, %v369_v16, 0.0 }
  0xf0   : > { %373 = vadd.xlane.f32.xlu0 %v372_v18 }
  0xf4   : > { %376 = vadd.xlane.f32.xlu0 %v375_v19 }
 0x17d   : > { %v374_v26 = vpop.xlane.xlu0 %373 }
 0x17e   : > { %717 = vrsqrt.f32 %v374_v26  ;;  %vm380_vm2 = vcmp.eq.f32.partialorder %v374_v26, inf  ;;  %v383_v30 = vand.u32 2147483648, %v374_v26  ;;  %vm382_vm3 = vcmp.eq.f32.partialorder %v374_v26, 0.0 }
 0x181   : > { %v377_v27 = vpop.xlane.xlu0 %376 }
 0x182   : > { %719 = vrsqrt.f32 %v377_v27  ;;  %vm387_vm4 = vcmp.eq.f32.partialorder %v377_v27, inf  ;;  %v390_v36 = vand.u32 2147483648, %v377_v27  ;;  %vm389_vm5 = vcmp.eq.f32.partialorder %v377_v27, 0.0 }
 0x188   : > { %v718_v28 = vpop.eup %717 }
 0x189   : > { %v379_v29 = vmul.f32 %v718_v28, %v374_v26 }
 0x18b   : > { %v381_v31 = vsel %vm380_vm2, %v374_v26, %v379_v29 }
 0x18c   : > { %v720_v32 = vpop.eup %719  ;;  %v384_v33 = vsel %vm382_vm3, %v383_v30, %v381_v31 }
 0x18d   : > { %v386_v34 = vmul.f32 %v720_v32, %v377_v27  ;;  %v392_v35 = vadd.f32 1e-08, %v384_v33 }
 0x18f   : > { %v388_v37 = vsel %vm387_vm4, %v377_v27, %v386_v34  ;;  %721 = vrcp.f32 %v392_v35 }
 0x190   : > { %v391_v38 = vsel %vm389_vm5, %v390_v36, %v388_v37 }
 0x191   : > { %v393_v39 = vadd.f32 1e-08, %v391_v38 }
 0x193   : > { %723 = vrcp.f32 %v393_v39 }
 0x199   : > { %v722_v40 = vpop.eup %721 }
 0x19a   : > { %v395_v41 = vmul.f32 %v722_v40, %v360_v15 }
 0x19c   : > { %679 = vmatprep.mubr.msk.f32.mxu1 %vm371_vm1, %v395_v41 }
 0x19d   : > { %v724_v42 = vpop.eup %723 }
 0x19e   : > { %v397_v43 = vmul.f32 %v724_v42, %v670_v14 }
 0x1a0   : > { %680 = vmatmul.mubr.msk.f32.vlgmr.msra.gmra.mrb[0].mxu1 %vm371_vm1, %v397_v43 }
 0x273   : > { %v681_v44 = vpop.f32.mrb[0].mxu1 }
 0x274   : > { %v474_v45 = vpop.f32.mrb[1].mxu1  ;;  %v484_v47 = vmul.f32 0.25, %v681_v44 }
 0x275   : > { %v483_v46 = vmul.f32 0.25, %v474_v45 }
 0x276   : > { %v489_v49 = vsel %vm485_vm6, %v484_v47, -inf }
 0x277   : > { %v486_v48 = vsel %vm485_vm6, %v483_v46, -inf }
 0x278   : > { %487 = vmax.xlane.f32.xlu1 %v486_v48 }
 0x27c   : > { %490 = vmax.xlane.f32.xlu1 %v489_v49 }
 0x305   : > { %v488_v51 = vpop.xlane.xlu1 %487 }
 0x306   : > { %v492_v52 = vsub.f32 %v483_v46, %v488_v51 }
 0x308   : > { %v494_v53 = vmul.f32 1.442695, %v492_v52 }
 0x309   : > { %v491_v54 = vpop.xlane.xlu1 %490 }
 0x30a   : > { %725 = vpow2.f32 %v494_v53  ;;  %v493_v55 = vsub.f32 %v484_v47, %v491_v54 }
 0x30c   : > { %v496_v56 = vmul.f32 1.442695, %v493_v55 }
 0x30e   : > { %727 = vpow2.f32 %v496_v56 }
 0x314   : > { %v726_v57 = vpop.eup %725 }
 0x315   : > { %v498_v58 = vsel %vm485_vm6, %v726_v57, 0.0 }
 0x316   : > { %499 = vadd.xlane.f32.xlu0 %v498_v58 }
 0x318   : > { %v728_v59 = vpop.eup %727 }
 0x319   : > { %v501_v60 = vsel %vm485_vm6, %v728_v59, 0.0 }
 0x31a   : > { %502 = vadd.xlane.f32.xlu1 %v501_v60 }
 0x32b   : > { %524 = vperm.xlu1 %716, %v510_v61  }
 0x32c   : > { %519 = vperm.xlu0 %715, %v509_v62  }
 0x3a3   : > { %v500_v63 = vpop.xlane.xlu0 %499 }
 0x3a4   : > { %729 = vrcp.f32 %v500_v63 }
 0x3a7   : > { %v503_v0 = vpop.xlane.xlu1 %502 }
 0x3a8   : > { %731 = vrcp.f32 %v503_v0 }
 0x3ab   : > { %v520_v3 = vpop.permute.xlu0 %519  ;;  %v525_v4 = vpop.permute.xlu1 %524 }
 0x3ac   : > { %v527_v5 = vmul.f32 %v632_v1, %v520_v3  ;;  %v528_v6 = vmul.f32 %v632_v1, %v525_v4 }
 0x3ae   : > { %v730_v7 = vpop.eup %729  ;;  %v536_v8 = vadd.f32 %v633_v2, %v527_v5  ;;  %v537_v10 = vadd.f32 %v633_v2, %v528_v6 }
 0x3af   : > { %v506_v9 = vmul.f32 %v730_v7, %v726_v57 }
 0x3b1   : > { %v538_v11 = vmul.f32 %v536_v8, %v506_v9 }
 0x3b2   : > { %v732_v12 = vpop.eup %731 }
 0x3b3   : > { %v540_v13 = vsel %vm485_vm6, %v538_v11, 0.0  ;;  %v507_v14 = vmul.f32 %v732_v12, %v728_v59 }
 0x3b4   : > { %541 = vadd.xlane.f32.xlu1 %v540_v13 }
 0x3b5   : > { %v539_v15 = vmul.f32 %v537_v10, %v507_v14 }
 0x3b7   : > { %v543_v16 = vsel %vm485_vm6, %v539_v15, 0.0 }
 0x3b8   : > { %544 = vadd.xlane.f32.xlu0 %v543_v16 }
 0x441   : > { %v542_v17 = vpop.xlane.xlu1 %541 }
 0x442   : > { %547 = vst.msk [vmem:[%s275_s15] sm:$0xff] %vm546_vm7, %v542_v17 }
 0x445   : > { %v545_v18 = vpop.xlane.xlu0 %544 }
 0x446   : > { %548 = vst.msk [vmem:[%s275_s15 + $0x8] sm:$0xff] %vm546_vm7, %v545_v18 }
 0x447 PF: > { %s16_s21 = sadd.s32 1, %s739_s21  }
 0x448   : > { %p13_p4 = scmp.ge.s32.totalorder %s16_s21, 5  }
 0x44a   :  { %15 = sbr.rel (!%p13_p4) target bundleno = 1 (0x1), region = 77 }

</bundles_post_ra>
